<compile_context>
chip_gen: v7x
topology: tpu7x:2x2x1
jax: 0.10.0
libtpu: 0.0.40
codegen_flags: <defaults>
</compile_context>

<pallas_src>
import functools

import jax
import jax.numpy as jnp
from jax.experimental import pallas as pl
from jax.experimental.pallas import tpu as pltpu


_LANE = 128
_SUBLANE = 8


def _cdiv(a, b):
    return -(-a // b)


def _round_up(x, m):
    return (x + m - 1) // m * m


# ----------------------------- kernels --------------------------------------


def _ca_fused_kernel(x_ref, w1_ref, b1_ref, w2_ref, b2_ref, o_ref):
    # x_ref: (Nb, C, HW)   w1: (C, Ce) pre-scaled by 1/HW and transposed   b1: (1, Ce)
    # w2: (Ce, C) transposed   b2: (1, C)
    x = x_ref[...]
    # raw spatial sums, accumulated in f32 without materializing an f32 slab copy
    y = jnp.sum(x, axis=-1, dtype=jnp.float32)                                # (Nb, C)
    # squeeze-excite MLP, batched over the Nb samples of this block (one real matmul
    # per step instead of Nb degenerate 1-column matmuls)
    z = jnp.dot(y, w1_ref[...], preferred_element_type=jnp.float32) + b1_ref[...]
    z = jnp.maximum(z, 0.0)                                                   # (Nb, Ce)
    s = jnp.dot(z, w2_ref[...], preferred_element_type=jnp.float32) + b2_ref[...]
    s = jax.nn.sigmoid(s)                                                     # (Nb, C)
    # fused channel re-scale + residual:  x * s + x  ==  x * (s + 1), computed in f32
    # (keeps bf16 inputs at f32 parity on the per-channel scale), cast at the store.
    o_ref[...] = (x * (s + 1.0)[:, :, None]).astype(o_ref.dtype)


def _ca_pool_mlp_kernel(x_ref, w1_ref, b1_ref, w2_ref, b2_ref, s_ref, *, hw, tile):
    # Fallback pass 1: x_ref is an (N, C, tile) spatial tile; s_ref is the resident
    # (N, C) accumulator that becomes the final per-(n, c) scale (sigmoid(...) + 1).
    k = pl.program_id(0)

    @pl.when(k == 0)
    def _init():
        s_ref[...] = jnp.zeros_like(s_ref)

    x = x_ref[...]
    if hw % tile != 0:
        # ragged tail tile: the OOB columns hold unspecified data; zero them out
        col = jax.lax.broadcasted_iota(jnp.int32, x.shape, 2) + k * tile
        x = jnp.where(col < hw, x, 0)
    s_ref[...] += jnp.sum(x, axis=-1, dtype=jnp.float32)                      # (N, C)

    @pl.when(k == pl.num_programs(0) - 1)
    def _finalize():
        y = s_ref[...]                                                        # raw sums
        z = jnp.dot(y, w1_ref[...], preferred_element_type=jnp.float32) + b1_ref[...]
        z = jnp.maximum(z, 0.0)
        s = jnp.dot(z, w2_ref[...], preferred_element_type=jnp.float32) + b2_ref[...]
        s_ref[...] = jax.nn.sigmoid(s) + 1.0


def _ca_scale_kernel(s_ref, x_ref, o_ref):
    # Fallback pass 2: pure streaming x * (s + 1) over HW tiles.  OOB tail columns of
    # the last tile are discarded by Pallas on writeback, so no masking is needed.
    o_ref[...] = (x_ref[...] * s_ref[...][:, :, None]).astype(o_ref.dtype)


# --------------------------- tiling heuristics -------------------------------


def _vmem_budget():
    """(per-slab byte budget, scoped vmem_limit_bytes), generation-aware.

    The fused path double-buffers both the input and the output slab (~4x slab), plus
    weights and f32 compute intermediates, so the slab budget is ~1/6 of the scoped
    limit.  v5e/v6e (128 MiB VMEM) -> 64 MiB limit, ~10.7 MiB slabs; v7x (64 MiB VMEM)
    -> 48 MiB limit, 8 MiB slabs.
    """
    try:
        cap = int(pltpu.get_tpu_info().vmem_capacity_bytes)
    except Exception:
        cap = 128 << 20
    cap = max(cap, 16 << 20)
    vmem_limit = min(cap * 3 // 4, 64 << 20)
    slab_budget = vmem_limit // 6
    return slab_budget, vmem_limit


def _pick_batch_block(n, per_sample_bytes, budget):
    """Largest Nb whose slab fits the budget (Nb need not divide N: the grid uses
    cdiv and the last block is partial).  Prefer >= 4 grid steps (>= 2 per TensorCore
    on v7x megacore) when each slab would still be >= ~2 MiB."""
    nb_cap = budget // per_sample_bytes
    if nb_cap < 1:
        return None
    nb = min(n, nb_cap)
    min_slab = 2 << 20
    target_steps = 4
    if _cdiv(n, nb) < target_steps:
        want = _cdiv(n, target_steps)
        if 1 <= want < nb and want * per_sample_bytes >= min_slab:
            nb = want
    return nb


def _pick_hw_tile(n, c_pad, hw, itemsize, budget):
    """Largest multiple-of-128 tile T (<= HW rounded up) whose (N, C, T) slab fits the
    budget.  T need not divide HW: the grid uses cdiv and the ragged tail is masked."""
    max_lanes = budget // (n * c_pad * itemsize * _LANE)
    if max_lanes < 1:
        return None
    lanes = min(max_lanes, _cdiv(hw, _LANE))
    return lanes * _LANE


# ------------------------------ wrapper --------------------------------------


def ca_layer_w(x_nchw, w1, b1, w2, b2, *, max_block_bytes=None, vmem_limit_bytes=None):
    """out = x * sigmoid(W2 @ relu(W1 @ mean_hw(x) + b1) + b2) + x.

    x_nchw: (N, C, H, W).  w1: (Ce, C), b1: (Ce,), w2: (C, Ce), b2: (C,)
    (weight_norm already folded into w1 / w2 — see weight_norm_effective).
    """
    N, C, H, W = x_nchw.shape
    HW = H * W
    Ce = w1.shape[0]
    dtype = x_nchw.dtype

    slab_budget, vmem_limit = _vmem_budget()
    if max_block_bytes is not None:
        slab_budget = max_block_bytes
    if vmem_limit_bytes is not None:
        vmem_limit = vmem_limit_bytes

    # (N, C, H, W) -> (N, C, HW) is a metadata-only reshape (contiguous); no HBM copy.
    x3 = x_nchw.reshape(N, C, HW)

    # One-time weight folds: transpose for batched (Nb, C) @ (C, Ce) matmuls and fold
    # the 1/HW pooling scale into the first conv weight so the kernel uses raw sums.
    w1t = (w1.astype(jnp.float32) / float(HW)).T          # (C, Ce)
    w2t = w2.astype(jnp.float32).T                        # (Ce, C)
    b1r = b1.astype(jnp.float32).reshape(1, Ce)
    b2r = b2.astype(jnp.float32).reshape(1, C)

    itemsize = jnp.dtype(dtype).itemsize
    c_pad = _round_up(C, _SUBLANE)                        # VMEM sublane padding
    hw_pad = _round_up(HW, _LANE)                         # VMEM lane padding
    per_sample_bytes = c_pad * hw_pad * itemsize

    weight_specs = [
        pl.BlockSpec((C, Ce), lambda *_: (0, 0)),
        pl.BlockSpec((1, Ce), lambda *_: (0, 0)),
        pl.BlockSpec((Ce, C), lambda *_: (0, 0)),
        pl.BlockSpec((1, C), lambda *_: (0, 0)),
    ]
    parallel_params = pltpu.CompilerParams(
        dimension_semantics=("parallel",), vmem_limit_bytes=vmem_limit)

    nb = _pick_batch_block(N, per_sample_bytes, slab_budget)

    if nb is not None:
        # -------- single fused pass: one HBM read + one HBM write of x --------
        # Block shape (nb, C, HW): last two dims equal the full array dims, so the
        # (8,128) rule is satisfied and a ragged HW only costs a masked tail store.
        out = pl.pallas_call(
            _ca_fused_kernel,
            out_shape=jax.ShapeDtypeStruct((N, C, HW), dtype),
            grid_spec=pltpu.PrefetchScalarGridSpec(
                num_scalar_prefetch=0,
                grid=(_cdiv(N, nb),),
                in_specs=[pl.BlockSpec((nb, C, HW), lambda n: (n, 0, 0))] + weight_specs,
                out_specs=pl.BlockSpec((nb, C, HW), lambda n: (n, 0, 0)),
            ),
            compiler_params=parallel_params,
        )(x3, w1t, b1r, w2t, b2r)
    else:
        # -------- large-HW fallback: two streaming passes over x, no padding --------
        t = _pick_hw_tile(N, c_pad, HW, itemsize, slab_budget)
        if t is None:
            # TODO(synk): also tile the batch axis in the fallback when N*C*128 elements
            # alone exceed the VMEM budget.
            raise ValueError("CALayerW: N*C too large to tile HW within the VMEM budget; "
                             "increase max_block_bytes.")
        grid_hw = _cdiv(HW, t)

        # pass 1: accumulate per-(n, c) spatial sums (masking the ragged HW tail),
        # then run the SE MLP once on the last grid step.
        pool_kernel = functools.partial(_ca_pool_mlp_kernel, hw=HW, tile=t)
        scale = pl.pallas_call(
            pool_kernel,
            out_shape=jax.ShapeDtypeStruct((N, C), jnp.float32),
            grid_spec=pltpu.PrefetchScalarGridSpec(
                num_scalar_prefetch=0,
                grid=(grid_hw,),
                in_specs=[pl.BlockSpec((N, C, t), lambda k: (0, 0, k))] + weight_specs,
                out_specs=pl.BlockSpec((N, C), lambda k: (0, 0)),
            ),
            compiler_params=pltpu.CompilerParams(
                dimension_semantics=("arbitrary",), vmem_limit_bytes=vmem_limit),
        )(x3, w1t, b1r, w2t, b2r)

        # pass 2: pure streaming x * (s + 1), tiled over HW ("parallel").
        out = pl.pallas_call(
            _ca_scale_kernel,
            out_shape=jax.ShapeDtypeStruct((N, C, HW), dtype),
            grid_spec=pltpu.PrefetchScalarGridSpec(
                num_scalar_prefetch=0,
                grid=(grid_hw,),
                in_specs=[
                    pl.BlockSpec((N, C), lambda k: (0, 0)),
                    pl.BlockSpec((N, C, t), lambda k: (0, 0, k)),
                ],
                out_specs=pl.BlockSpec((N, C, t), lambda k: (0, 0, k)),
            ),
            compiler_params=parallel_params,
        )(scale, x3)

    return out.reshape(N, C, H, W)


# --------------------------- reference & helpers ------------------------------


def weight_norm_effective(v, g):
    """Fold PyTorch weight_norm (dim=0): w = g * v / ||v|| per output channel."""
    norm = jnp.sqrt(jnp.sum(v * v, axis=1, keepdims=True))
    return g[:, None] * v / norm


def reference(x, w1, b1, w2, b2):
    # pure-JAX reference of the PyTorch forward
    xf = x.astype(jnp.float32)
    y = jnp.mean(xf, axis=(2, 3), keepdims=True)                           # (N,C,1,1)
    y = jnp.einsum('oc,ncij->noij', w1, y) + b1[None, :, None, None]
    y = jnp.maximum(y, 0.0)
    y = jnp.einsum('oc,ncij->noij', w2, y) + b2[None, :, None, None]
    y = jax.nn.sigmoid(y)
    return (xf * y + xf).astype(x.dtype)


if __name__ == "__main__":
    key = jax.random.PRNGKey(0)

    def make_params(k, C, expand=4):
        Ce = C * expand
        k_v1, k_g1, k_b1, k_v2, k_g2, k_b2 = jax.random.split(k, 6)
        v1 = jax.random.normal(k_v1, (Ce, C), dtype=jnp.float32) * 0.1
        g1 = jax.random.uniform(k_g1, (Ce,), dtype=jnp.float32, minval=0.5, maxval=1.5)
        b1 = jax.random.normal(k_b1, (Ce,), dtype=jnp.float32) * 0.1
        v2 = jax.random.normal(k_v2, (C, Ce), dtype=jnp.float32) * 0.1
        g2 = jax.random.uniform(k_g2, (C,), dtype=jnp.float32, minval=0.5, maxval=1.5)
        b2 = jax.random.normal(k_b2, (C,), dtype=jnp.float32) * 0.1
        return weight_norm_effective(v1, g1), b1, weight_norm_effective(v2, g2), b2

    k_p, k_x1, k_x2, k_x3, k_x4, k_x5 = jax.random.split(key, 6)
    C = 4
    w1, b1, w2, b2 = make_params(k_p, C)

    # 1) main path: batched single-pass fused kernel (N=2, C=4, 16x16).
    x1 = jax.random.normal(k_x1, (2, C, 16, 16), dtype=jnp.float32)
    out1 = jax.block_until_ready(ca_layer_w(x1, w1, b1, w2, b2))
    assert out1.shape == x1.shape
    assert jnp.allclose(out1, reference(x1, w1, b1, w2, b2), atol=1e-5, rtol=1e-5), \
        "single-pass mismatch"

    # 2) H*W not a multiple of 128 -> full-extent last dim, masked tail store (no pad).
    x2 = jax.random.normal(k_x2, (2, C, 10, 10), dtype=jnp.float32)
    out2 = jax.block_until_ready(ca_layer_w(x2, w1, b1, w2, b2))
    assert jnp.allclose(out2, reference(x2, w1, b1, w2, b2), atol=1e-5, rtol=1e-5), \
        "ragged-HW fused mismatch"

    # 3) non-divisor batch: N=3 with Nb=2 (partial last batch block).
    x3 = jax.random.normal(k_x3, (3, C, 16, 16), dtype=jnp.float32)
    out3 = jax.block_until_ready(
        ca_layer_w(x3, w1, b1, w2, b2, max_block_bytes=20 * 1024))
    assert jnp.allclose(out3, reference(x3, w1, b1, w2, b2), atol=1e-5, rtol=1e-5), \
        "partial-batch-block mismatch"

    # 4) force the large-HW two-pass fallback with a tiny slab budget (HW % tile == 0).
    x4 = jax.random.normal(k_x4, (2, C, 32, 32), dtype=jnp.float32)
    out4 = jax.block_until_ready(
        ca_layer_w(x4, w1, b1, w2, b2, max_block_bytes=16 * 1024))
    assert jnp.allclose(out4, reference(x4, w1, b1, w2, b2), atol=1e-5, rtol=1e-5), \
        "two-pass fallback mismatch"

    # 5) fallback with a ragged HW tail (30x30 -> 900, tile 256) exercising the mask.
    x5 = jax.random.normal(k_x5, (2, C, 30, 30), dtype=jnp.float32)
    out5 = jax.block_until_ready(
        ca_layer_w(x5, w1, b1, w2, b2, max_block_bytes=16 * 1024))
    assert jnp.allclose(out5, reference(x5, w1, b1, w2, b2), atol=1e-5, rtol=1e-5), \
        "ragged-tail fallback mismatch"

    # 6) bf16 input: f32-accumulated pooling / f32 scale, cast only at the store.
    x6 = jax.random.normal(k_x1, (2, C, 16, 16), dtype=jnp.bfloat16)
    out6 = jax.block_until_ready(ca_layer_w(x6, w1, b1, w2, b2))
    assert jnp.allclose(out6.astype(jnp.float32),
                        reference(x6, w1, b1, w2, b2).astype(jnp.float32),
                        atol=5e-2, rtol=5e-2), "bf16 mismatch"

    print("KERNEL_OK")
</pallas_src>

<mosaic_0001>
module attributes {stable_mosaic.version = 11 : i64} {
  func.func @_ca_fused_kernel(%arg0: i32, %arg1: memref<2x4x256xf32, #tpu.memory_space<vmem>>, %arg2: memref<4x16xf32, #tpu.memory_space<vmem>>, %arg3: memref<1x16xf32, #tpu.memory_space<vmem>>, %arg4: memref<16x4xf32, #tpu.memory_space<vmem>>, %arg5: memref<1x4xf32, #tpu.memory_space<vmem>>, %arg6: memref<2x4x256xf32, #tpu.memory_space<vmem>>) attributes {dimension_semantics = [#tpu.dimension_semantics<parallel>], iteration_bounds = array<i64: 1>, scalar_prefetch = 0 : i64, scratch_operands = 0 : i64, tpu.core_type = #tpu.core_type<tc>, window_params = [{transform_indices = @transform_0, window_bounds = array<i64: 2, 4, 256>}, {pipeline_mode = #tpu.pipeline_mode<synchronous>, transform_indices = @transform_1, window_bounds = array<i64: 4, 16>}, {pipeline_mode = #tpu.pipeline_mode<synchronous>, transform_indices = @transform_2, window_bounds = array<i64: 1, 16>}, {pipeline_mode = #tpu.pipeline_mode<synchronous>, transform_indices = @transform_3, window_bounds = array<i64: 16, 4>}, {pipeline_mode = #tpu.pipeline_mode<synchronous>, transform_indices = @transform_4, window_bounds = array<i64: 1, 4>}, {transform_indices = @transform_5, window_bounds = array<i64: 2, 4, 256>}]} {
    %c0 = arith.constant 0 : index
    %c0_0 = arith.constant 0 : index
    %c0_1 = arith.constant 0 : index
    %0 = vector.load %arg1[%c0, %c0_0, %c0_1] : memref<2x4x256xf32, #tpu.memory_space<vmem>>, vector<2x4x256xf32>
    %cst = arith.constant dense<0.000000e+00> : vector<2x4xf32>
    %1 = vector.multi_reduction <add>, %0, %cst [2] : vector<2x4x256xf32> to vector<2x4xf32>
    %c0_2 = arith.constant 0 : index
    %c0_3 = arith.constant 0 : index
    %2 = vector.load %arg2[%c0_2, %c0_3] : memref<4x16xf32, #tpu.memory_space<vmem>>, vector<4x16xf32>
    %cst_4 = arith.constant dense<0.000000e+00> : vector<2x16xf32>
    %3 = tpu.matmul %1, %2, %cst_4 {dimension_numbers = #tpu.dot_dimension_numbers<[1], [0], [0], [1], [0, 0, 1, 1], [], []>} : vector<2x4xf32>, vector<4x16xf32>, vector<2x16xf32> -> vector<2x16xf32>
    %c0_5 = arith.constant 0 : index
    %c0_6 = arith.constant 0 : index
    %4 = vector.load %arg3[%c0_5, %c0_6] : memref<1x16xf32, #tpu.memory_space<vmem>>, vector<1x16xf32>
    %5 = vector.broadcast %4 : vector<1x16xf32> to vector<2x16xf32>
    %6 = arith.addf %3, %5 : vector<2x16xf32>
    %cst_7 = arith.constant 0.000000e+00 : f32
    %7 = vector.broadcast %cst_7 : f32 to vector<2x16xf32>
    %8 = arith.maximumf %6, %7 : vector<2x16xf32>
    %c0_8 = arith.constant 0 : index
    %c0_9 = arith.constant 0 : index
    %9 = vector.load %arg4[%c0_8, %c0_9] : memref<16x4xf32, #tpu.memory_space<vmem>>, vector<16x4xf32>
    %cst_10 = arith.constant dense<0.000000e+00> : vector<2x4xf32>
    %10 = tpu.matmul %8, %9, %cst_10 {dimension_numbers = #tpu.dot_dimension_numbers<[1], [0], [0], [1], [0, 0, 1, 1], [], []>} : vector<2x16xf32>, vector<16x4xf32>, vector<2x4xf32> -> vector<2x4xf32>
    %c0_11 = arith.constant 0 : index
    %c0_12 = arith.constant 0 : index
    %11 = vector.load %arg5[%c0_11, %c0_12] : memref<1x4xf32, #tpu.memory_space<vmem>>, vector<1x4xf32>
    %12 = vector.broadcast %11 : vector<1x4xf32> to vector<2x4xf32>
    %13 = arith.addf %10, %12 : vector<2x4xf32>
    %14 = arith.negf %13 : vector<2x4xf32>
    %15 = math.exp %14 : vector<2x4xf32>
    %cst_13 = arith.constant 1.000000e+00 : f32
    %16 = vector.broadcast %cst_13 : f32 to vector<2x4xf32>
    %17 = arith.addf %16, %15 : vector<2x4xf32>
    %18 = arith.divf %16, %17 : vector<2x4xf32>
    %cst_14 = arith.constant 1.000000e+00 : f32
    %19 = vector.broadcast %cst_14 : f32 to vector<2x4xf32>
    %20 = arith.addf %18, %19 : vector<2x4xf32>
    %21 = vector.shape_cast %20 : vector<2x4xf32> to vector<2x4x1xf32>
    %22 = vector.broadcast %21 : vector<2x4x1xf32> to vector<2x4x256xf32>
    %23 = arith.mulf %0, %22 : vector<2x4x256xf32>
    %c0_15 = arith.constant 0 : index
    %c0_16 = arith.constant 0 : index
    %c0_17 = arith.constant 0 : index
    %24 = vector.load %arg6[%c0_15, %c0_16, %c0_17] : memref<2x4x256xf32, #tpu.memory_space<vmem>>, vector<2x4x256xf32>
    tpu.vector_store %arg6[%c0_15, %c0_16, %c0_17], %23 {strides = array<i32>} : memref<2x4x256xf32, #tpu.memory_space<vmem>>, vector<2x4x256xf32>,
    return
  }
  func.func @transform_0(%arg0: i32) -> (i32, i32, i32) {
    %c0_i32 = arith.constant 0 : i32
    %c0_i32_0 = arith.constant 0 : i32
    %c0_i32_1 = arith.constant 0 : i32
    return %arg0, %c0_i32, %c0_i32_0 : i32, i32, i32
  }
  func.func @transform_1(%arg0: i32) -> (i32, i32) {
    %c0_i32 = arith.constant 0 : i32
    %c0_i32_0 = arith.constant 0 : i32
    %c0_i32_1 = arith.constant 0 : i32
    return %c0_i32, %c0_i32_0 : i32, i32
  }
  func.func @transform_2(%arg0: i32) -> (i32, i32) {
    %c0_i32 = arith.constant 0 : i32
    %c0_i32_0 = arith.constant 0 : i32
    %c0_i32_1 = arith.constant 0 : i32
    return %c0_i32, %c0_i32_0 : i32, i32
  }
  func.func @transform_3(%arg0: i32) -> (i32, i32) {
    %c0_i32 = arith.constant 0 : i32
    %c0_i32_0 = arith.constant 0 : i32
    %c0_i32_1 = arith.constant 0 : i32
    return %c0_i32, %c0_i32_0 : i32, i32
  }
  func.func @transform_4(%arg0: i32) -> (i32, i32) {
    %c0_i32 = arith.constant 0 : i32
    %c0_i32_0 = arith.constant 0 : i32
    %c0_i32_1 = arith.constant 0 : i32
    return %c0_i32, %c0_i32_0 : i32, i32
  }
  func.func @transform_5(%arg0: i32) -> (i32, i32, i32) {
    %c0_i32 = arith.constant 0 : i32
    %c0_i32_0 = arith.constant 0 : i32
    %c0_i32_1 = arith.constant 0 : i32
    return %arg0, %c0_i32, %c0_i32_0 : i32, i32, i32
  }
}

</mosaic_0001>

<bundles_post_ra>
// kernel: tpu_custom_call.1
= control target key start
LH: loop header
LB: loop body
LE: loop exit
PB: predicated region body
PF: predicated region fallthrough
CT: control target
= control target key end

     0   :  { %10 = vsyncpa [#allocation3], 0  ;;  %s670_s0 = inlined_call_operand.hbm [shape: f32[2,4,256], index: 0, kind: input, shape index: {}]   ;;  %s671_s1 = inlined_call_operand.hbm [shape: f32[4,16], index: 1, kind: input, shape index: {}]   ;;  %s672_s2 = inlined_call_operand.hbm [shape: f32[1,16], index: 2, kind: input, shape index: {}]   ;;  %s673_s3 = inlined_call_operand.hbm [shape: f32[16,4], index: 3, kind: input, shape index: {}]   ;;  %s674_s4 = inlined_call_operand.hbm [shape: f32[1,4], index: 4, kind: input, shape index: {}]   ;;  %s675_s5 = inlined_call_operand.hbm [shape: f32[2,4,256], index: 5, kind: output, shape index: {}]  }
   0x1   :  { %11 = vsyncpa [#allocation6], 0 }
   0x2   :  { %12 = vsyncpa [#allocation9], 0 }
   0x3   :  { %13 = vsyncpa [#allocation4], 0  ;;  %s530_s18 = smov [#allocation5]   ;;  %s390_s22 = scalar_lea.hbm %s671_s1, 64 }
   0x4   :  { %s32_s19 = sshll.u32 %s530_s18, 4  ;;  %p391_p0 = scmp.ne.s32.totalorder %s671_s1, %s390_s22  ;;  %s33_s19 = int_to_ptr.vmem [resolvable:$true] %s32_s19 }
   0x5   :  { %p394_p1 = scmp.lt.u32.totalorder %s390_s22, %s671_s1 }
   0x7   :  { %p396_p2 = pnand %p394_p1, %p391_p0 }
   0x9   :  { %399 = shalt.err (!%p396_p2)
}
   0xa   :  { %s400_s27 = scalar_lea.vmem %s33_s19, 64  ;;  %p405_p4 = scmp.lt.s32.totalorder %s33_s19, %s33_s19 }
   0xb   :  { %p401_p3 = scmp.ne.s32.totalorder %s33_s19, %s400_s27  ;;  %p406_p5 = scmp.lt.s32.totalorder %s400_s27, %s400_s27 }
   0xd   :  { %p407_p6 = por %p406_p5, %p405_p4 }
   0xf   :  { %p408_p7 = pnand %p407_p6, %p401_p3 }
  0x11   :  { %411 = shalt.err (!%p408_p7)
}
  0x12   :  { %35 = dma.hbm_to_vmem [thread:$0]  %s671_s1, 64, %s33_s19, [#allocation6]  }
  0x13   :  { %s531_s30 = smov [#allocation8]   ;;  %s532_s7 = smov [#allocation2]  }
  0x14   :  { %s51_s6 = sshll.u32 %s531_s30, 4  ;;  %s19_s8 = sshll.u32 %s532_s7, 4  ;;  %s52_s6 = int_to_ptr.vmem [resolvable:$true] %s51_s6  ;;  %s20_s8 = int_to_ptr.vmem [resolvable:$true] %s19_s8 }
  0x15   :  { %s412_s11 = scalar_lea.hbm %s673_s3, 256 }
  0x16   :  { %p413_p8 = scmp.ne.s32.totalorder %s673_s3, %s412_s11  ;;  %p416_p9 = scmp.lt.u32.totalorder %s412_s11, %s673_s3 }
  0x18   :  { %p418_p10 = pnand %p416_p9, %p413_p8 }
  0x1a   :  { %421 = shalt.err (!%p418_p10)
}
  0x1b   :  { %s422_s1 = scalar_lea.vmem %s52_s6, 256  ;;  %p427_p12 = scmp.lt.s32.totalorder %s52_s6, %s52_s6 }
  0x1c   :  { %p423_p11 = scmp.ne.s32.totalorder %s52_s6, %s422_s1  ;;  %p428_p13 = scmp.lt.s32.totalorder %s422_s1, %s422_s1 }
  0x1e   :  { %p429_p0 = por %p428_p13, %p427_p12 }
  0x20   :  { %p430_p1 = pnand %p429_p0, %p423_p11 }
  0x22   :  { %433 = shalt.err (!%p430_p1)
}
  0x23   :  { %s533_s16 = smov 128   ;;  %s534_s17 = smov 8  }
  0x24   :  { %57 = dma.hbm_to_vmem [thread:$0]  %s673_s3, 256, %s52_s6, [#allocation9], %s533_s16, %s533_s16, %s534_s17  }
  0x25   :  { %s434_s22 = scalar_lea.hbm %s670_s0, 256 }
  0x26   :  { %p435_p2 = scmp.ne.s32.totalorder %s670_s0, %s434_s22  ;;  %p438_p3 = scmp.lt.u32.totalorder %s434_s22, %s670_s0 }
  0x28   :  { %p440_p4 = pnand %p438_p3, %p435_p2 }
  0x2a   :  { %443 = shalt.err (!%p440_p4)
}
  0x2b   :  { %s444_s27 = scalar_lea.vmem %s20_s8, 256  ;;  %p449_p6 = scmp.lt.s32.totalorder %s20_s8, %s20_s8 }
  0x2c   :  { %p445_p5 = scmp.ne.s32.totalorder %s20_s8, %s444_s27  ;;  %p450_p7 = scmp.lt.s32.totalorder %s444_s27, %s444_s27 }
  0x2e   :  { %p451_p8 = por %p450_p7, %p449_p6 }
  0x30   :  { %p452_p9 = pnand %p451_p8, %p445_p5 }
  0x32   :  { %455 = shalt.err (!%p452_p9)
}
  0x33   :  { %25 = dma.hbm_to_vmem [thread:$0]  %s670_s0, 256, %s20_s8, [#allocation3], %s533_s16, %s533_s16, %s534_s17  }
  0x34   :  { %s535_s29 = smov [#allocation7]   ;;  %s536_s6 = smov [#allocation10]  }
  0x35   :  { %s42_s30 = sshll.u32 %s535_s29, 4  ;;  %s64_s7 = sshll.u32 %s536_s6, 4  ;;  %s43_s30 = int_to_ptr.vmem [resolvable:$true] %s42_s30  ;;  %s65_s7 = int_to_ptr.vmem [resolvable:$true] %s64_s7 }
  0x36   :  { %s456_s11 = scalar_lea.hbm %s672_s2, 16 }
  0x37   :  { %p457_p10 = scmp.ne.s32.totalorder %s672_s2, %s456_s11  ;;  %p460_p11 = scmp.lt.u32.totalorder %s456_s11, %s672_s2 }
  0x39   :  { %p462_p12 = pnand %p460_p11, %p457_p10 }
  0x3b   :  { %465 = shalt.err (!%p462_p12)
}
  0x3c   :  { %s466_s0 = scalar_lea.vmem %s43_s30, 16  ;;  %s470_s8 = scalar_lea.vmem %s43_s30, 32 }
  0x3d   :  { %p467_p13 = scmp.ne.s32.totalorder %s43_s30, %s466_s0  ;;  %p471_p0 = scmp.lt.s32.totalorder %s43_s30, %s43_s30 }
  0x3e   :  { %p472_p1 = scmp.lt.s32.totalorder %s470_s8, %s466_s0 }
  0x40   :  { %p473_p2 = por %p472_p1, %p471_p0 }
  0x42   :  { %p474_p3 = pnand %p473_p2, %p467_p13 }
  0x44   :  { %477 = shalt.err (!%p474_p3)
}
  0x45   :  { %45 = dma.hbm_to_vmem [thread:$0]  %s672_s2, 16, %s43_s30, [#allocation6]  }
  0x46   :  { %s478_s21 = scalar_lea.hbm %s674_s4, 16 }
  0x47   :  { %p479_p4 = scmp.ne.s32.totalorder %s674_s4, %s478_s21  ;;  %p482_p5 = scmp.lt.u32.totalorder %s478_s21, %s674_s4 }
  0x49   :  { %p484_p6 = pnand %p482_p5, %p479_p4 }
  0x4b   :  { %487 = shalt.err (!%p484_p6)
}
  0x4c   :  { %s488_s26 = scalar_lea.vmem %s65_s7, 16  ;;  %s492_s27 = scalar_lea.vmem %s65_s7, 32 }
  0x4d   :  { %p489_p7 = scmp.ne.s32.totalorder %s65_s7, %s488_s26  ;;  %p493_p8 = scmp.lt.s32.totalorder %s65_s7, %s65_s7 }
  0x4e   :  { %p494_p9 = scmp.lt.s32.totalorder %s492_s27, %s488_s26 }
  0x50   :  { %p495_p10 = por %p494_p9, %p493_p8 }
  0x52   :  { %p496_p11 = pnand %p495_p10, %p489_p7 }
  0x54   :  { %499 = shalt.err (!%p496_p11)
}
  0x55   :  { %67 = dma.hbm_to_vmem [thread:$0]  %s674_s4, 16, %s65_s7, [#allocation9]  }
  0x56   :  { %522 = dma.done.wait [#allocation3], 256  }
  0x57   :  { %523 = vsyncadd [#allocation3], 4294967040 }
  0x58   :  { %524 = dma.done.wait [#allocation6], 80  }
  0x59   :  { %525 = vsyncadd [#allocation6], 4294967216 }
  0x5a   :  { %526 = dma.done.wait [#allocation9], 272  }
  0x5b   :  { %527 = vsyncadd [#allocation9], 4294967024  ;;  %vm91_vm0 = vcmask 1043456   ;;  %v638_v0 = vld [vmem:[#allocation2] sm:$0xff]  ;;  %v640_v1 = vld [vmem:[#allocation2 + $0x8] sm:$0xff]  ;;  %v537_v11 = vmov 0.0   ;;  %v112_v12 = vlaneseq }
  0x5c   :  { %v87_v2 = vcombine.high %v638_v0, %v638_v0  ;;  %v92_v3 = vsel %vm91_vm0, %v638_v0, 0.0  ;;  %v88_v4 = vcombine.high %v640_v1, %v640_v1  ;;  %v97_v6 = vsel %vm91_vm0, %v640_v1, 0.0  ;;  %v102_v10 = vld [vmem:[#allocation5] sm:$0xf]  ;;  %357 = vmatprep.subr.mxu0 %v537_v11  ;;  %v201_v21 = vld [vmem:[#allocation8] sm:$0xff]  ;;  %v202_v22 = vld [vmem:[#allocation8 + $0x8] sm:$0xff] }
  0x5d   :  { %vm538_vm1 = vmmov 0   ;;  %358 = vmatpush3.msk.msra.mxu0 %vm91_vm0, %v102_v10  ;;  %v113_v13 = vand.u32 127, %v112_v12  ;;  %v115_v14 = vshrl.u32 %v112_v12, 7  ;;  %vm122_vm2 = vcmask 1041409   ;;  %v346_v25 = vld [vmem:[#allocation7] ss:$0 sm:$0xff] }
  0x5e   :  { %v93_v5 = vsel %vm91_vm0, %v87_v2, 0.0  ;;  %v98_v7 = vsel %vm91_vm0, %v88_v4, 0.0  ;;  %359 = vmatprep.mubr.msk.f32.mxu0 %vm538_vm1, %v537_v11  ;;  %366 = vmatprep.mubr.msk.f32.mxu1 %vm538_vm1, %v537_v11  ;;  %vm124_vm3 = vcmask 31744   ;;  %v370_v23 = vpack.c.bf16 %v202_v22, %v201_v21  ;;  %v349_v30 = vld [vmem:[#allocation10] ss:$0 sm:$0xff]  ;;  %s541_s4 = smov [#allocation11]  }
  0x5f   :  { %v94_v8 = vadd.f32 %v93_v5, %v92_v3  ;;  %v99_v9 = vadd.f32 %v98_v7, %v97_v6  ;;  %v116_v16 = vsub.s32 %v113_v13, %v115_v14  ;;  %v539_v24 = vmov 0.0|0.0   ;;  %s332_s28 = sshll.u32 %s541_s4, 4  ;;  %s333_s28 = int_to_ptr.vmem [resolvable:$true] %s332_s28 }
  0x60   :  { %369 = vmatprep.subr.bf16.mxu1 %v539_v24  ;;  %vm210_vm4 = vcmask 130048   ;;  %v293_v37 = vsub.s32 0, %v115_v14  ;;  %v300_v41 = vsub.s32 1, %v115_v14  ;;  %v540_v43 = vmov 839922192   ;;  %s500_s29 = scalar_lea.vmem %s333_s28, 256  ;;  %p505_p13 = scmp.lt.s32.totalorder %s333_s28, %s333_s28 }
  0x61   :  { %95 = vadd.xlane.f32.xlu0 %v94_v8  ;;  %371 = vmatpush3.bf16.msra.mxu1 %v370_v23  ;;  %v308_v44 = vunpack.c.l.s4 %v540_v43  ;;  %p501_p12 = scmp.ne.s32.totalorder %s333_s28, %s500_s29  ;;  %p506_p0 = scmp.lt.s32.totalorder %s500_s29, %s500_s29 }
  0x63   :  { %v309_v45 = vunpack.c.0.s8 %v308_v44  ;;  %p507_p1 = por %p506_p0, %p505_p13 }
  0x65   :  { %100 = vadd.xlane.f32.xlu0 %v99_v9  ;;  %v312_v46 = vsub.s32 %v309_v45, %v115_v14  ;;  %p508_p2 = pnand %p507_p1, %p501_p12 }
  0xee   :  { %v96_v15 = vpop.xlane.xlu0 %95 }
  0xef   :  { %v117_v18 = vrot.slane %v96_v15, %v116_v16 }
  0xf2   :  { %v101_v17 = vpop.xlane.xlu0 %100 }
  0xf3   :  { %v121_v19 = vrot.slane %v101_v17, %v116_v16 }
  0xf5   :  { %v123_v20 = vsel %vm122_vm2, %v121_v19, %v117_v18 }
  0xf6   :  { %360 = vmatmul.mubr.msk.f32.vlgmr.msra.gmra.mrb[0].mxu0 %vm124_vm3, %v123_v20 }
 0x1c9   :  { %v196_v26 = vpop.f32.mrb[0].mxu0 }
 0x1ca   :  { %v197_v27 = vadd.f32 %v346_v25, %v196_v26  ;;  %v361_v28 = vpop.f32.mrb[1].mxu0 }
 0x1cc   :  { %v200_v29 = vmax.f32 %v197_v27, 0.0 }
 0x1ce   :  { %367 = vmatmul.mubr.msk.f32.vlgmr.msra.gmra.mrb[0].mxu1 %vm210_vm4, %v200_v29 }
 0x2a1   :  { %v280_v31 = vpop.f32.mrb[0].mxu1 }
 0x2a2   :  { %v281_v32 = vadd.f32 %v349_v30, %v280_v31  ;;  %v368_v33 = vpop.f32.mrb[1].mxu1 }
 0x2a4   :  { %v351_v34 = vmul.f32 -1.442695, %v281_v32 }
 0x2a6   :  { %386 = vpow2.f32 %v351_v34 }
 0x2b0   :  { %v387_v35 = vpop.eup %386 }
 0x2b1   :  { %v287_v36 = vadd.f32 1.0, %v387_v35 }
 0x2b3   :  { %388 = vrcp.f32 %v287_v36 }
 0x2bd   :  { %v389_v38 = vpop.eup %388 }
 0x2be   :  { %v290_v39 = vadd.f32 1.0, %v389_v38 }
 0x2c0   :  { %v294_v40 = vrot.slane %v290_v39, %v293_v37  ;;  %v301_v42 = vrot.slane %v290_v39, %v300_v41 }
 0x2c2   :  { %296 = vbcast.lane.b32.xlu1 %v294_v40, 256 }
 0x2c6   :  { %303 = vbcast.lane.b32.xlu1 %v301_v42, 256 }
 0x334   :  { %v297_v47 = vpop.permute.xlu1 %296 }
 0x335   :  { %v313_v48 = vrot.slane %v297_v47, %v312_v46 }
 0x337   :  { %v323_v49 = vmul.f32 %v313_v48, %v638_v0 }
 0x338   :  { %v304_v50 = vpop.permute.xlu1 %303 }
 0x339   :  { %325 = vst [vmem:[#allocation11] sm:$0xff] %v323_v49  ;;  %v320_v51 = vrot.slane %v304_v50, %v312_v46 }
 0x33b   :  { %v324_v52 = vmul.f32 %v320_v51, %v640_v1 }
 0x33d   :  { %326 = vst [vmem:[#allocation11 + $0x8] sm:$0xff] %v324_v52 }
 0x33e   :  { %511 = shalt.err (!%p508_p2)
}
 0x33f   :  { %s512_s7 = scalar_lea.hbm %s675_s5, 256 }
 0x340   :  { %p513_p3 = scmp.ne.s32.totalorder %s675_s5, %s512_s7  ;;  %p516_p4 = scmp.lt.u32.totalorder %s512_s7, %s675_s5 }
 0x342   :  { %p518_p5 = pnand %p516_p4, %p513_p3 }
 0x344   :  { %521 = shalt.err (!%p518_p5)
}
 0x345   :  { %338 = dma.vmem_to_hbm [thread:$0]  %s333_s28, 256, %s675_s5, [#allocation4], %s533_s16, %s533_s16, %s534_s17  }
 0x346   :  { %528 = dma.done.wait [#allocation4], 256  }
 0x347   :  { %529 = vsyncadd [#allocation4], 4294967040 }
 0x348   :  { %342 = vsyncpa [#allocation3], 1 }
 0x349   :  { %343 = vsyncpa [#allocation6], 1 }
 0x34a   :  { %344 = vsyncpa [#allocation9], 1 }
 0x34b   :  { %345 = vsyncpa [#allocation4], 1 }

</bundles_post_ra>
